<compile_context>
chip_gen: v7x
topology: tpu7x:2x2x1
jax: 0.10.0
libtpu: 0.0.40
codegen_flags: <defaults>
</compile_context>

<pallas_src>
import math
import functools

import jax
import jax.numpy as jnp
from jax import lax
from jax.experimental import pallas as pl
from jax.experimental.pallas import tpu as pltpu


def _vmem_limit_bytes():
    """Generation-aware VMEM budget: leave ~24 MiB headroom under physical VMEM,
    cap at 100 MiB (v5e/v6e have 128 MiB, v7x has 64 MiB per TC)."""
    default_cap = 64 << 20
    try:
        info = pltpu.get_tpu_info()
        cap = int(getattr(info, "vmem_capacity_bytes", default_cap))
    except Exception:
        cap = default_cap
    return int(max(32 << 20, min(cap - (24 << 20), 100 << 20)))


_VMEM_LIMIT = _vmem_limit_bytes()


# ---------------------------------------------------------------------------
# tiling helpers
# ---------------------------------------------------------------------------
def _pick_tile(dim, target, quantum):
    """Largest divisor of `dim` that is <= target and a multiple of `quantum`.
    Falls back to the full dim (always legal) but refuses silently creating a
    huge single block that would blow the VMEM budget."""
    if dim <= target:
        return dim
    for t in range(target, quantum - 1, -quantum):
        if dim % t == 0:
            return t
    if dim > 4 * target:
        raise ValueError(
            f"_pick_tile: dim {dim} has no divisor <= {target} that is a "
            f"multiple of {quantum}; pad the input to a tile-friendly size.")
    return dim


def _heads_per_block(num_heads, head_dim, target_lanes=128):
    """Pack heads so each block's lane width is a multiple of 128 (or all of H):
    required for legal head-column BlockSpecs and lane-dense tiles."""
    if num_heads * head_dim <= target_lanes:
        return num_heads
    for hp in range(1, num_heads):
        if num_heads % hp == 0 and (hp * head_dim) % target_lanes == 0:
            return hp
    return num_heads


# ---------------------------------------------------------------------------
# Kernel 1: fused QKV projection (weight-stationary: (3,H,H) resident in VMEM)
# ---------------------------------------------------------------------------
def _qkv_kernel(x_ref, w_ref, b_ref, o_ref):
    x = x_ref[...]                                        # (TM, H) bf16
    for p in range(3):                                    # static unroll q/k/v
        y = jnp.dot(x, w_ref[p], preferred_element_type=jnp.float32) + b_ref[p]
        o_ref[p] = y.astype(o_ref.dtype)


def qkv_projection(x, w_qkv, b_qkv):
    """x: (B,S,H) bf16; w_qkv: (3,H,H) bf16; b_qkv: (3,1,H) f32 -> (3,B,S,H)."""
    B, S, H = x.shape
    M = B * S
    x2 = x.reshape(M, H)
    TM = _pick_tile(M, 512, 16)
    out = pl.pallas_call(
        _qkv_kernel,
        grid=(M // TM,),                                  # single large parallel axis
        in_specs=[
            pl.BlockSpec((TM, H), lambda i: (i, 0)),
            pl.BlockSpec((3, H, H), lambda i: (0, 0, 0)),   # resident: 1 DMA total
            pl.BlockSpec((3, 1, H), lambda i: (0, 0, 0)),
        ],
        out_specs=pl.BlockSpec((3, TM, H), lambda i: (0, i, 0)),
        out_shape=jax.ShapeDtypeStruct((3, M, H), x.dtype),
        compiler_params=pltpu.CompilerParams(
            dimension_semantics=("parallel",),
            vmem_limit_bytes=_VMEM_LIMIT),
    )(x2, w_qkv, b_qkv)
    return out.reshape(3, B, S, H)


# ---------------------------------------------------------------------------
# Kernel 2a: flash-style attention (context only; no (S,S) materialization)
# ---------------------------------------------------------------------------
def _flash_attn_kernel(q_ref, k_ref, v_ref, mask_ref, ctx_ref,
                       m_sc, l_sc, acc_sc, *, scale, hp, dh):
    ki = pl.program_id(3)

    @pl.when(ki == 0)
    def _init():
        m_sc[...] = jnp.full(m_sc.shape, -jnp.inf, dtype=m_sc.dtype)
        l_sc[...] = jnp.zeros(l_sc.shape, dtype=l_sc.dtype)
        acc_sc[...] = jnp.zeros(acc_sc.shape, dtype=acc_sc.dtype)

    # scale folded into q once per tile (one (TQ,HB) multiply, stays bf16)
    q = q_ref[0, 0] * scale        # (TQ, HB)
    k = k_ref[0, 0]                # (TK, HB)
    v = v_ref[0, 0]                # (TK, HB)
    mask = mask_ref[0, 0]          # (1, TK) f32, broadcasts over query rows

    for i in range(hp):            # static unroll over packed heads
        qh = q[:, i * dh:(i + 1) * dh]
        kh = k[:, i * dh:(i + 1) * dh]
        vh = v[:, i * dh:(i + 1) * dh]
        s = lax.dot_general(qh, kh, (((1,), (1,)), ((), ())),
                            preferred_element_type=jnp.float32)
        s = s + mask
        m_prev = m_sc[i]                                   # (TQ, 1)
        m_new = jnp.maximum(m_prev, jnp.max(s, axis=-1, keepdims=True))
        alpha = jnp.exp(m_prev - m_new)
        p = jnp.exp(s - m_new)
        l_sc[i] = alpha * l_sc[i] + jnp.sum(p, axis=-1, keepdims=True)
        pv = lax.dot_general(p.astype(vh.dtype), vh, (((1,), (0,)), ((), ())),
                             preferred_element_type=jnp.float32)
        acc_sc[:, i * dh:(i + 1) * dh] = (
            alpha * acc_sc[:, i * dh:(i + 1) * dh] + pv)
        m_sc[i] = m_new

    @pl.when(ki == pl.num_programs(3) - 1)
    def _finalize():
        cols = []
        for i in range(hp):
            inv = pl.reciprocal(l_sc[i])         # exact; runs once per tile
            cols.append(acc_sc[:, i * dh:(i + 1) * dh] * inv)
        # one lane-dense HB-wide store
        ctx_ref[0] = jnp.concatenate(cols, axis=-1).astype(ctx_ref.dtype)


# ---------------------------------------------------------------------------
# Kernel 2b: attention variant that also emits (B,nH,S,S) probabilities
# (only used when output_attentions=True; probs kept in f32)
# ---------------------------------------------------------------------------
def _attn_probs_kernel(q_ref, k_ref, v_ref, mask_ref, ctx_ref, probs_ref,
                       *, scale, hp, dh):
    q = q_ref[0, 0] * scale        # (TQ, HB)
    k = k_ref[0, 0]                # (S,  HB)
    v = v_ref[0, 0]                # (S,  HB)
    mask = mask_ref[0, 0]          # (1, S)

    cols = []
    for i in range(hp):
        qh = q[:, i * dh:(i + 1) * dh]
        kh = k[:, i * dh:(i + 1) * dh]
        vh = v[:, i * dh:(i + 1) * dh]
        s = lax.dot_general(qh, kh, (((1,), (1,)), ((), ())),
                            preferred_element_type=jnp.float32)
        s = s + mask
        m = jnp.max(s, axis=-1, keepdims=True)
        e = jnp.exp(s - m)
        p = e * pl.reciprocal(jnp.sum(e, axis=-1, keepdims=True))
        # dropout(attention_probs) is identity in inference mode.
        probs_ref[0, i] = p.astype(probs_ref.dtype)
        cols.append(lax.dot_general(p.astype(vh.dtype), vh,
                                    (((1,), (0,)), ((), ())),
                                    preferred_element_type=jnp.float32))
    ctx_ref[0] = jnp.concatenate(cols, axis=-1).astype(ctx_ref.dtype)


def self_attention(qkv, ext_mask, num_heads, output_attentions, out_dtype):
    """qkv: (3,B,S,H) fused projections; ext_mask: (B,1,1,S) additive f32 mask."""
    _, B, S, H = qkv.shape
    dh = H // num_heads
    hp = _heads_per_block(num_heads, dh)
    HB = hp * dh
    n_hg = num_heads // hp
    TQ = _pick_tile(S, 256, 16)
    TK = _pick_tile(S, 128, 128)
    scale = 1.0 / math.sqrt(dh)

    if not output_attentions:
        ctx = pl.pallas_call(
            functools.partial(_flash_attn_kernel, scale=scale, hp=hp, dh=dh),
            grid=(S // TQ, B, n_hg, S // TK),          # largest parallel axis first
            in_specs=[
                pl.BlockSpec((1, 1, TQ, HB), lambda qi, b, hg, ki: (0, b, qi, hg)),
                pl.BlockSpec((1, 1, TK, HB), lambda qi, b, hg, ki: (1, b, ki, hg)),
                pl.BlockSpec((1, 1, TK, HB), lambda qi, b, hg, ki: (2, b, ki, hg)),
                pl.BlockSpec((1, 1, 1, TK), lambda qi, b, hg, ki: (b, 0, 0, ki)),
            ],
            out_specs=pl.BlockSpec((1, TQ, HB), lambda qi, b, hg, ki: (b, qi, hg)),
            out_shape=jax.ShapeDtypeStruct((B, S, H), out_dtype),
            scratch_shapes=[
                pltpu.VMEM((hp, TQ, 1), jnp.float32),   # m
                pltpu.VMEM((hp, TQ, 1), jnp.float32),   # l
                pltpu.VMEM((TQ, HB), jnp.float32),      # acc, heads packed on lanes
            ],
            compiler_params=pltpu.CompilerParams(
                dimension_semantics=("parallel", "parallel", "parallel", "arbitrary"),
                vmem_limit_bytes=_VMEM_LIMIT),
        )(qkv, qkv, qkv, ext_mask)
        return ctx, None

    ctx, probs = pl.pallas_call(
        functools.partial(_attn_probs_kernel, scale=scale, hp=hp, dh=dh),
        grid=(S // TQ, B, n_hg),
        in_specs=[
            pl.BlockSpec((1, 1, TQ, HB), lambda qi, b, hg: (0, b, qi, hg)),
            pl.BlockSpec((1, 1, S, HB), lambda qi, b, hg: (1, b, 0, hg)),
            pl.BlockSpec((1, 1, S, HB), lambda qi, b, hg: (2, b, 0, hg)),
            pl.BlockSpec((1, 1, 1, S), lambda qi, b, hg: (b, 0, 0, 0)),
        ],
        out_specs=[
            pl.BlockSpec((1, TQ, HB), lambda qi, b, hg: (b, qi, hg)),
            pl.BlockSpec((1, hp, TQ, S), lambda qi, b, hg: (b, hg, qi, 0)),
        ],
        out_shape=[
            jax.ShapeDtypeStruct((B, S, H), out_dtype),
            jax.ShapeDtypeStruct((B, num_heads, S, S), jnp.float32),
        ],
        compiler_params=pltpu.CompilerParams(
            dimension_semantics=("parallel", "parallel", "parallel"),
            vmem_limit_bytes=_VMEM_LIMIT),
    )(qkv, qkv, qkv, ext_mask)
    return ctx, probs


# ---------------------------------------------------------------------------
# Kernel 3: dense + bias + residual + LayerNorm  — BertSelfOutput
# (dropout is identity in inference mode; weight resident)
# ---------------------------------------------------------------------------
def _dense_residual_ln_kernel(x_ref, res_ref, w_ref, b_ref, g_ref, bt_ref,
                              o_ref, *, eps):
    y = jnp.dot(x_ref[...], w_ref[...], preferred_element_type=jnp.float32)
    y = y + b_ref[...] + res_ref[...].astype(jnp.float32)
    mu = jnp.mean(y, axis=-1, keepdims=True)
    var = jnp.mean(jnp.square(y - mu), axis=-1, keepdims=True)
    y = (y - mu) * lax.rsqrt(var + eps)
    o_ref[...] = (y * g_ref[...] + bt_ref[...]).astype(o_ref.dtype)


def dense_residual_layernorm(x3, res3, w, b, gamma, beta, eps):
    B, S, Din = x3.shape
    Dout = w.shape[1]
    M = B * S
    x2 = x3.reshape(M, Din)
    r2 = res3.reshape(M, Dout)
    TM = _pick_tile(M, 512, 16)
    out = pl.pallas_call(
        functools.partial(_dense_residual_ln_kernel, eps=eps),
        grid=(M // TM,),
        in_specs=[
            pl.BlockSpec((TM, Din), lambda i: (i, 0)),
            pl.BlockSpec((TM, Dout), lambda i: (i, 0)),
            pl.BlockSpec((Din, Dout), lambda i: (0, 0)),   # resident weight
            pl.BlockSpec((1, Dout), lambda i: (0, 0)),
            pl.BlockSpec((1, Dout), lambda i: (0, 0)),
            pl.BlockSpec((1, Dout), lambda i: (0, 0)),
        ],
        out_specs=pl.BlockSpec((TM, Dout), lambda i: (i, 0)),
        out_shape=jax.ShapeDtypeStruct((M, Dout), x3.dtype),
        compiler_params=pltpu.CompilerParams(
            dimension_semantics=("parallel",),
            vmem_limit_bytes=_VMEM_LIMIT),
    )(x2, r2, w, b, gamma, beta)
    return out.reshape(B, S, Dout)


# ---------------------------------------------------------------------------
# Kernel 4: fused FFN — BertIntermediate + BertOutput in one kernel.
# The (TM, I) GELU intermediate never touches HBM: it is produced chunk-by-chunk
# (K-tiled accumulator) and immediately consumed by the second matmul.
# ---------------------------------------------------------------------------
def _ffn_kernel(x_ref, wi_ref, bi_ref, wo_ref, bo_ref, g_ref, bt_ref, o_ref,
                *, eps, ck, n_chunks):
    x = x_ref[...]                                            # (TM, H) bf16
    acc = jnp.zeros((x.shape[0], o_ref.shape[-1]), jnp.float32)
    for c in range(n_chunks):                                 # static unroll
        c0 = c * ck
        h = jnp.dot(x, wi_ref[:, c0:c0 + ck],
                    preferred_element_type=jnp.float32) + bi_ref[:, c0:c0 + ck]
        h = jax.nn.gelu(h, approximate=True)
        acc = acc + jnp.dot(h.astype(x.dtype), wo_ref[c0:c0 + ck, :],
                            preferred_element_type=jnp.float32)
    y = acc + bo_ref[...] + x.astype(jnp.float32)             # residual = x
    mu = jnp.mean(y, axis=-1, keepdims=True)
    var = jnp.mean(jnp.square(y - mu), axis=-1, keepdims=True)
    y = (y - mu) * lax.rsqrt(var + eps)
    o_ref[...] = (y * g_ref[...] + bt_ref[...]).astype(o_ref.dtype)


def ffn_fused(x3, wi, bi, wo, bo, gamma, beta, eps):
    B, S, H = x3.shape
    I = wi.shape[1]
    M = B * S
    x2 = x3.reshape(M, H)
    TM = _pick_tile(M, 256, 16)
    CK = _pick_tile(I, 512, 128)
    out = pl.pallas_call(
        functools.partial(_ffn_kernel, eps=eps, ck=CK, n_chunks=I // CK),
        grid=(M // TM,),
        in_specs=[
            pl.BlockSpec((TM, H), lambda i: (i, 0)),
            pl.BlockSpec((H, I), lambda i: (0, 0)),    # resident weights
            pl.BlockSpec((1, I), lambda i: (0, 0)),
            pl.BlockSpec((I, H), lambda i: (0, 0)),
            pl.BlockSpec((1, H), lambda i: (0, 0)),
            pl.BlockSpec((1, H), lambda i: (0, 0)),
            pl.BlockSpec((1, H), lambda i: (0, 0)),
        ],
        out_specs=pl.BlockSpec((TM, H), lambda i: (i, 0)),
        out_shape=jax.ShapeDtypeStruct((M, H), x3.dtype),
        compiler_params=pltpu.CompilerParams(
            dimension_semantics=("parallel",),
            vmem_limit_bytes=_VMEM_LIMIT),
    )(x2, wi, bi, wo, bo, gamma, beta)
    return out.reshape(B, S, H)


# ---------------------------------------------------------------------------
# BertLayer / BertModel('selfatt') forward glue
# ---------------------------------------------------------------------------
def bert_layer(hidden_states, params, num_heads, ext_mask,
               layer_norm_eps=1e-12, output_attentions=False):
    qkv = qkv_projection(hidden_states, params["w_qkv"], params["b_qkv"])
    ctx, probs = self_attention(qkv, ext_mask, num_heads,
                                output_attentions, hidden_states.dtype)
    # BertSelfOutput
    attn_out = dense_residual_layernorm(ctx, hidden_states,
                                        params["w_ao"], params["b_ao"],
                                        params["g_ao"], params["bt_ao"],
                                        layer_norm_eps)
    # BertIntermediate + BertOutput (fused)
    layer_out = ffn_fused(attn_out, params["w_i"], params["b_i"],
                          params["w_o"], params["b_o"],
                          params["g_o"], params["bt_o"], layer_norm_eps)
    if output_attentions:
        return (layer_out, probs)
    return (layer_out,)


def bert_model_selfatt(step, hidden_states, attention_mask, layer_params,
                       num_heads, layer_norm_eps=1e-12, output_attentions=False):
    """BertModel.forward(type='selfatt'): build the extended additive mask and
    run only encoder layer `step` (the encoder loop breaks at i == step)."""
    B, S, H = hidden_states.shape
    if attention_mask is None:
        ext_mask = jnp.zeros((B, 1, 1, S), jnp.float32)
    else:
        # get_extended_attention_mask for a 2-D mask: (1 - m) * -10000
        ext_mask = ((1.0 - attention_mask.astype(jnp.float32))
                    * -10000.0).reshape(B, 1, 1, S)
    return bert_layer(hidden_states, layer_params[step], num_heads, ext_mask,
                      layer_norm_eps, output_attentions)


# ---------------------------------------------------------------------------
# Deterministic parameter init (nn.Linear / nn.LayerNorm defaults)
# Weights bf16, biases / LayerNorm params f32.
# ---------------------------------------------------------------------------
def init_params(key, hidden_size, intermediate_size, param_dtype=jnp.bfloat16):
    H, I = hidden_size, intermediate_size
    ks = jax.random.split(key, 6)

    def lin(k, din, dout):
        k1, k2 = jax.random.split(k)
        bound = 1.0 / math.sqrt(din)
        w = jax.random.uniform(k1, (din, dout), jnp.float32, -bound, bound)
        b = jax.random.uniform(k2, (1, dout), jnp.float32, -bound, bound)
        return w.astype(param_dtype), b

    wq, bq = lin(ks[0], H, H)
    wk, bk = lin(ks[1], H, H)
    wv, bv = lin(ks[2], H, H)
    w_ao, b_ao = lin(ks[3], H, H)
    w_i, b_i = lin(ks[4], H, I)
    w_o, b_o = lin(ks[5], I, H)
    return {
        "w_qkv": jnp.stack([wq, wk, wv]),   # (3, H, H) bf16, stored (in, out)
        "b_qkv": jnp.stack([bq, bk, bv]),   # (3, 1, H) f32
        "w_ao": w_ao, "b_ao": b_ao,
        "g_ao": jnp.ones((1, H), jnp.float32), "bt_ao": jnp.zeros((1, H), jnp.float32),
        "w_i": w_i, "b_i": b_i,
        "w_o": w_o, "b_o": b_o,
        "g_o": jnp.ones((1, H), jnp.float32), "bt_o": jnp.zeros((1, H), jnp.float32),
    }


# ---------------------------------------------------------------------------
# Pure-JAX f32 reference (mirrors the PyTorch forward) for correctness checking
# (uses the same bf16-quantized weight values, upcast to f32)
# ---------------------------------------------------------------------------
def _reference_layer(x, p, num_heads, attention_mask, eps):
    B, S, H = x.shape
    dh = H // num_heads
    x = x.astype(jnp.float32)
    wqkv = p["w_qkv"].astype(jnp.float32)
    bqkv = p["b_qkv"].astype(jnp.float32)
    ext = ((1.0 - attention_mask) * -10000.0)[:, None, None, :]
    q = x @ wqkv[0] + bqkv[0]
    k = x @ wqkv[1] + bqkv[1]
    v = x @ wqkv[2] + bqkv[2]

    def split(a):
        return a.reshape(B, S, num_heads, dh).transpose(0, 2, 1, 3)

    qh, kh, vh = split(q), split(k), split(v)
    s = jnp.einsum("bhqd,bhkd->bhqk", qh, kh) / math.sqrt(dh) + ext
    pr = jax.nn.softmax(s, axis=-1)
    ctx = jnp.einsum("bhqk,bhkd->bhqd", pr, vh).transpose(0, 2, 1, 3).reshape(B, S, H)

    def ln(a, g, bt):
        mu = a.mean(-1, keepdims=True)
        var = ((a - mu) ** 2).mean(-1, keepdims=True)
        return (a - mu) / jnp.sqrt(var + eps) * g + bt

    ao = ln(ctx @ p["w_ao"].astype(jnp.float32) + p["b_ao"] + x,
            p["g_ao"], p["bt_ao"])
    inter = jax.nn.gelu(ao @ p["w_i"].astype(jnp.float32) + p["b_i"],
                        approximate=True)
    out = ln(inter @ p["w_o"].astype(jnp.float32) + p["b_o"] + ao,
             p["g_o"], p["bt_o"])
    return out, pr


if __name__ == "__main__":
    B, S, H, NH, I = 2, 8, 32, 4, 64
    EPS = 1e-12
    ACT_DTYPE = jnp.bfloat16

    root = jax.random.PRNGKey(0)
    k_x, k_p, k_m = jax.random.split(root, 3)

    hidden_states = jax.random.normal(k_x, (B, S, H), jnp.float32).astype(ACT_DTYPE)
    params = init_params(k_p, H, I, param_dtype=ACT_DTYPE)
    # 0/1 key mask as BertModel.forward expects (converted to additive inside).
    attention_mask = jax.random.bernoulli(k_m, p=0.8, shape=(B, S)).astype(jnp.float32)

    # Fast path: flash attention, no probs materialization.
    (out_fast,) = bert_model_selfatt(0, hidden_states, attention_mask, [params],
                                     NH, EPS, output_attentions=False)
    # Probs path: separate kernel variant that also returns attention_probs.
    out_full, probs = bert_model_selfatt(0, hidden_states, attention_mask, [params],
                                         NH, EPS, output_attentions=True)
    jax.block_until_ready((out_fast, out_full, probs))

    ref_out, ref_probs = _reference_layer(hidden_states, params, NH,
                                          attention_mask, EPS)

    out_fast32 = out_fast.astype(jnp.float32)
    out_full32 = out_full.astype(jnp.float32)

    assert out_fast.shape == (B, S, H) and out_fast.dtype == ACT_DTYPE
    assert out_full.shape == (B, S, H)
    assert probs.shape == (B, NH, S, S) and probs.dtype == jnp.float32
    assert jnp.allclose(jnp.sum(probs, axis=-1), 1.0, atol=1e-3)
    assert jnp.allclose(probs, ref_probs, atol=2e-2)
    # bf16 activations / weights (f32 accumulation) vs f32 reference
    assert jnp.allclose(out_full32, ref_out, atol=5e-2, rtol=5e-2)
    assert jnp.allclose(out_fast32, ref_out, atol=5e-2, rtol=5e-2)
    assert jnp.allclose(out_fast32, out_full32, atol=3e-2, rtol=3e-2)

    print("KERNEL_OK")
</pallas_src>

<mosaic_0001>
module attributes {stable_mosaic.version = 11 : i64} {
  func.func @_qkv_kernel(%arg0: i32, %arg1: memref<16x32xbf16, #tpu.memory_space<vmem>>, %arg2: memref<3x32x32xbf16, #tpu.memory_space<vmem>>, %arg3: memref<3x1x32xf32, #tpu.memory_space<vmem>>, %arg4: memref<3x16x32xbf16, #tpu.memory_space<vmem>>) attributes {dimension_semantics = [#tpu.dimension_semantics<parallel>], iteration_bounds = array<i64: 1>, scalar_prefetch = 0 : i64, scratch_operands = 0 : i64, tpu.core_type = #tpu.core_type<tc>, window_params = [{transform_indices = @transform_0, window_bounds = array<i64: 16, 32>}, {pipeline_mode = #tpu.pipeline_mode<synchronous>, transform_indices = @transform_1, window_bounds = array<i64: 3, 32, 32>}, {pipeline_mode = #tpu.pipeline_mode<synchronous>, transform_indices = @transform_2, window_bounds = array<i64: 3, 1, 32>}, {transform_indices = @transform_3, window_bounds = array<i64: 3, 16, 32>}]} {
    %c0 = arith.constant 0 : index
    %c0_0 = arith.constant 0 : index
    %0 = vector.load %arg1[%c0, %c0_0] : memref<16x32xbf16, #tpu.memory_space<vmem>>, vector<16x32xbf16>
    %c0_1 = arith.constant 0 : index
    %c0_2 = arith.constant 0 : index
    %c0_3 = arith.constant 0 : index
    %1 = vector.load %arg2[%c0_1, %c0_2, %c0_3] : memref<3x32x32xbf16, #tpu.memory_space<vmem>>, vector<1x32x32xbf16>
    %2 = vector.shape_cast %1 : vector<1x32x32xbf16> to vector<32x32xbf16>
    %cst = arith.constant dense<0.000000e+00> : vector<16x32xf32>
    %3 = tpu.matmul %0, %2, %cst {dimension_numbers = #tpu.dot_dimension_numbers<[1], [0], [0], [1], [0, 0, 1, 1], [], []>} : vector<16x32xbf16>, vector<32x32xbf16>, vector<16x32xf32> -> vector<16x32xf32>
    %c0_4 = arith.constant 0 : index
    %c0_5 = arith.constant 0 : index
    %c0_6 = arith.constant 0 : index
    %4 = vector.load %arg3[%c0_4, %c0_5, %c0_6] : memref<3x1x32xf32, #tpu.memory_space<vmem>>, vector<1x1x32xf32>
    %5 = vector.shape_cast %4 : vector<1x1x32xf32> to vector<1x32xf32>
    %6 = vector.broadcast %5 : vector<1x32xf32> to vector<16x32xf32>
    %7 = arith.addf %3, %6 : vector<16x32xf32>
    %8 = arith.truncf %7 : vector<16x32xf32> to vector<16x32xbf16>
    %c0_7 = arith.constant 0 : index
    %c0_8 = arith.constant 0 : index
    %c0_9 = arith.constant 0 : index
    %9 = vector.load %arg4[%c0_7, %c0_8, %c0_9] : memref<3x16x32xbf16, #tpu.memory_space<vmem>>, vector<1x16x32xbf16>
    %10 = vector.shape_cast %9 : vector<1x16x32xbf16> to vector<16x32xbf16>
    %11 = vector.shape_cast %8 : vector<16x32xbf16> to vector<1x16x32xbf16>
    tpu.vector_store %arg4[%c0_7, %c0_8, %c0_9], %11 {strides = array<i32>} : memref<3x16x32xbf16, #tpu.memory_space<vmem>>, vector<1x16x32xbf16>,
    %c1 = arith.constant 1 : index
    %c0_10 = arith.constant 0 : index
    %c0_11 = arith.constant 0 : index
    %12 = vector.load %arg2[%c1, %c0_10, %c0_11] : memref<3x32x32xbf16, #tpu.memory_space<vmem>>, vector<1x32x32xbf16>
    %13 = vector.shape_cast %12 : vector<1x32x32xbf16> to vector<32x32xbf16>
    %cst_12 = arith.constant dense<0.000000e+00> : vector<16x32xf32>
    %14 = tpu.matmul %0, %13, %cst_12 {dimension_numbers = #tpu.dot_dimension_numbers<[1], [0], [0], [1], [0, 0, 1, 1], [], []>} : vector<16x32xbf16>, vector<32x32xbf16>, vector<16x32xf32> -> vector<16x32xf32>
    %c1_13 = arith.constant 1 : index
    %c0_14 = arith.constant 0 : index
    %c0_15 = arith.constant 0 : index
    %15 = vector.load %arg3[%c1_13, %c0_14, %c0_15] : memref<3x1x32xf32, #tpu.memory_space<vmem>>, vector<1x1x32xf32>
    %16 = vector.shape_cast %15 : vector<1x1x32xf32> to vector<1x32xf32>
    %17 = vector.broadcast %16 : vector<1x32xf32> to vector<16x32xf32>
    %18 = arith.addf %14, %17 : vector<16x32xf32>
    %19 = arith.truncf %18 : vector<16x32xf32> to vector<16x32xbf16>
    %c1_16 = arith.constant 1 : index
    %c0_17 = arith.constant 0 : index
    %c0_18 = arith.constant 0 : index
    %20 = vector.load %arg4[%c1_16, %c0_17, %c0_18] : memref<3x16x32xbf16, #tpu.memory_space<vmem>>, vector<1x16x32xbf16>
    %21 = vector.shape_cast %20 : vector<1x16x32xbf16> to vector<16x32xbf16>
    %22 = vector.shape_cast %19 : vector<16x32xbf16> to vector<1x16x32xbf16>
    tpu.vector_store %arg4[%c1_16, %c0_17, %c0_18], %22 {strides = array<i32>} : memref<3x16x32xbf16, #tpu.memory_space<vmem>>, vector<1x16x32xbf16>,
    %c2 = arith.constant 2 : index
    %c0_19 = arith.constant 0 : index
    %c0_20 = arith.constant 0 : index
    %23 = vector.load %arg2[%c2, %c0_19, %c0_20] : memref<3x32x32xbf16, #tpu.memory_space<vmem>>, vector<1x32x32xbf16>
    %24 = vector.shape_cast %23 : vector<1x32x32xbf16> to vector<32x32xbf16>
    %cst_21 = arith.constant dense<0.000000e+00> : vector<16x32xf32>
    %25 = tpu.matmul %0, %24, %cst_21 {dimension_numbers = #tpu.dot_dimension_numbers<[1], [0], [0], [1], [0, 0, 1, 1], [], []>} : vector<16x32xbf16>, vector<32x32xbf16>, vector<16x32xf32> -> vector<16x32xf32>
    %c2_22 = arith.constant 2 : index
    %c0_23 = arith.constant 0 : index
    %c0_24 = arith.constant 0 : index
    %26 = vector.load %arg3[%c2_22, %c0_23, %c0_24] : memref<3x1x32xf32, #tpu.memory_space<vmem>>, vector<1x1x32xf32>
    %27 = vector.shape_cast %26 : vector<1x1x32xf32> to vector<1x32xf32>
    %28 = vector.broadcast %27 : vector<1x32xf32> to vector<16x32xf32>
    %29 = arith.addf %25, %28 : vector<16x32xf32>
    %30 = arith.truncf %29 : vector<16x32xf32> to vector<16x32xbf16>
    %c2_25 = arith.constant 2 : index
    %c0_26 = arith.constant 0 : index
    %c0_27 = arith.constant 0 : index
    %31 = vector.load %arg4[%c2_25, %c0_26, %c0_27] : memref<3x16x32xbf16, #tpu.memory_space<vmem>>, vector<1x16x32xbf16>
    %32 = vector.shape_cast %31 : vector<1x16x32xbf16> to vector<16x32xbf16>
    %33 = vector.shape_cast %30 : vector<16x32xbf16> to vector<1x16x32xbf16>
    tpu.vector_store %arg4[%c2_25, %c0_26, %c0_27], %33 {strides = array<i32>} : memref<3x16x32xbf16, #tpu.memory_space<vmem>>, vector<1x16x32xbf16>,
    return
  }
  func.func @transform_0(%arg0: i32) -> (i32, i32) {
    %c0_i32 = arith.constant 0 : i32
    %c0_i32_0 = arith.constant 0 : i32
    return %arg0, %c0_i32 : i32, i32
  }
  func.func @transform_1(%arg0: i32) -> (i32, i32, i32) {
    %c0_i32 = arith.constant 0 : i32
    %c0_i32_0 = arith.constant 0 : i32
    %c0_i32_1 = arith.constant 0 : i32
    %c0_i32_2 = arith.constant 0 : i32
    return %c0_i32, %c0_i32_0, %c0_i32_1 : i32, i32, i32
  }
  func.func @transform_2(%arg0: i32) -> (i32, i32, i32) {
    %c0_i32 = arith.constant 0 : i32
    %c0_i32_0 = arith.constant 0 : i32
    %c0_i32_1 = arith.constant 0 : i32
    %c0_i32_2 = arith.constant 0 : i32
    return %c0_i32, %c0_i32_0, %c0_i32_1 : i32, i32, i32
  }
  func.func @transform_3(%arg0: i32) -> (i32, i32, i32) {
    %c0_i32 = arith.constant 0 : i32
    %c0_i32_0 = arith.constant 0 : i32
    %c0_i32_1 = arith.constant 0 : i32
    return %c0_i32, %arg0, %c0_i32_0 : i32, i32, i32
  }
}

</mosaic_0001>

<bundles_post_ra>
// kernel: tpu_custom_call.1
= control target key start
LH: loop header
LB: loop body
LE: loop exit
PB: predicated region body
PF: predicated region fallthrough
CT: control target
= control target key end

     0   :  { %8 = vsyncpa [#allocation3], 0  ;;  %s538_s0 = inlined_call_operand.hbm [shape: bf16[16,32], index: 0, kind: input, shape index: {}]   ;;  %s539_s1 = inlined_call_operand.hbm [shape: bf16[3,32,32], index: 1, kind: input, shape index: {}]   ;;  %s540_s2 = inlined_call_operand.vmem [shape: f32[3,1,32], index: 2, kind: input, shape index: {}]   ;;  %s541_s3 = inlined_call_operand.hbm [shape: bf16[3,16,32], index: 3, kind: output, shape index: {}]  }
   0x1   :  { %9 = vsyncpa [#allocation6], 0 }
   0x2   :  { %10 = vsyncpa [#allocation4], 0  ;;  %s448_s12 = smov [#allocation2]   ;;  %s376_s16 = scalar_lea.hbm %s538_s0, 128 }
   0x3   :  { %s16_s13 = sshll.u32 %s448_s12, 4  ;;  %p377_p0 = scmp.ne.s32.totalorder %s538_s0, %s376_s16  ;;  %s17_s13 = int_to_ptr.vmem [resolvable:$true] %s16_s13 }
   0x4   :  { %p380_p1 = scmp.lt.u32.totalorder %s376_s16, %s538_s0 }
   0x6   :  { %p382_p2 = pnand %p380_p1, %p377_p0 }
   0x8   :  { %385 = shalt.err (!%p382_p2)
}
   0x9   :  { %s386_s21 = scalar_lea.vmem %s17_s13, 128  ;;  %p391_p4 = scmp.lt.s32.totalorder %s17_s13, %s17_s13 }
   0xa   :  { %p387_p3 = scmp.ne.s32.totalorder %s17_s13, %s386_s21  ;;  %p392_p5 = scmp.lt.s32.totalorder %s386_s21, %s386_s21 }
   0xc   :  { %p393_p6 = por %p392_p5, %p391_p4 }
   0xe   :  { %p394_p7 = pnand %p393_p6, %p387_p3 }
  0x10   :  { %397 = shalt.err (!%p394_p7)
}
  0x11   :  { %s449_s22 = smov 64   ;;  %s450_s23 = smov 4  }
  0x12   :  { %22 = dma.hbm_to_vmem [thread:$0]  %s538_s0, 128, %s17_s13, [#allocation3], %s449_s22, %s449_s22, %s450_s23  }
  0x13   :  { %s451_s26 = smov [#allocation5]   ;;  %s398_s30 = scalar_lea.hbm %s539_s1, 768 }
  0x14   :  { %s28_s27 = sshll.u32 %s451_s26, 4  ;;  %p399_p8 = scmp.ne.s32.totalorder %s539_s1, %s398_s30  ;;  %s29_s27 = int_to_ptr.vmem [resolvable:$true] %s28_s27 }
  0x15   :  { %p402_p9 = scmp.lt.u32.totalorder %s398_s30, %s539_s1 }
  0x17   :  { %p404_p10 = pnand %p402_p9, %p399_p8 }
  0x19   :  { %407 = shalt.err (!%p404_p10)
}
  0x1a   :  { %s408_s8 = scalar_lea.vmem %s29_s27, 768  ;;  %p413_p12 = scmp.lt.s32.totalorder %s29_s27, %s29_s27 }
  0x1b   :  { %p409_p11 = scmp.ne.s32.totalorder %s29_s27, %s408_s8  ;;  %p414_p13 = scmp.lt.s32.totalorder %s408_s8, %s408_s8 }
  0x1d   :  { %p415_p0 = por %p414_p13, %p413_p12 }
  0x1f   :  { %p416_p1 = pnand %p415_p0, %p409_p11 }
  0x21   :  { %419 = shalt.err (!%p416_p1)
}
  0x22   :  { %34 = dma.hbm_to_vmem [thread:$0]  %s539_s1, 768, %s29_s27, [#allocation6], %s449_s22, %s449_s22, %s450_s23  }
  0x23   :  { %442 = dma.done.wait [#allocation3], 128  }
  0x24   :  { %443 = vsyncadd [#allocation3], 4294967168 }
  0x25   :  { %444 = dma.done.wait [#allocation6], 768  }
  0x26   :  { %445 = vsyncadd [#allocation6], 4294966528  ;;  %v452_v0 = vmov 0.0   ;;  %vm453_vm0 = vmmov 0   ;;  %v369_v1 = vld [vmem:[#allocation5] sm:$0xff]   ;;  %v370_v2 = vld [vmem:[#allocation5 + $0x8] sm:$0xff]  }
  0x27   :  { %338 = vmatprep.subr.bf16.mxu0 %v452_v0  ;;  %346 = vmatprep.subr.bf16.mxu1 %v452_v0  ;;  %v371_v3 = vld [vmem:[#allocation5 + $0x10] sm:$0xff]   ;;  %v372_v4 = vld [vmem:[#allocation2] sm:$0xff]   ;;  %vm74_vm1 = vcmask 261120   ;;  %v373_v6 = vld [vmem:[#allocation5 + $0x20] sm:$0xff]   ;;  %vm127_vm2 = vcmask 257024   ;;  %s454_s15 = smov [#allocation7]  }
  0x28   :  { %342 = vmatprep.mubr.msk.bf16.mxu0 %vm453_vm0, %v452_v0  ;;  %350 = vmatprep.mubr.msk.bf16.mxu1 %vm453_vm0, %v452_v0  ;;  %v374_v5 = vld [vmem:[#allocation5 + $0x18] sm:$0xff]   ;;  %v375_v7 = vld [vmem:[#allocation5 + $0x28] sm:$0xff]   ;;  %s289_s16 = sshll.u32 %s454_s15, 4  ;;  %s290_s16 = int_to_ptr.vmem [resolvable:$true] %s289_s16 }
  0x29   :  { %339 = vmatpush3.bf16.msra.mxu0 %v369_v1  ;;  %347 = vmatpush3.bf16.msra.mxu1 %v371_v3  ;;  %v302_v8 = vld [vmem:[%s540_s2] ss:$0 sm:$0xff]  ;;  %v310_v10 = vld [vmem:[%s540_s2 + $0x1] ss:$0 sm:$0xff]  ;;  %v317_v25 = vld [vmem:[%s540_s2 + $0x2] ss:$0 sm:$0xff]  ;;  %p425_p3 = scmp.lt.s32.totalorder %s290_s16, %s290_s16 }
  0x2a   :  { %340 = vmatprep.subr.bf16.mxu0 %v452_v0  ;;  %348 = vmatprep.subr.bf16.mxu1 %v452_v0  ;;  %s420_s2 = scalar_lea.vmem %s290_s16, 384 }
  0x2b   :  { %p421_p2 = scmp.ne.s32.totalorder %s290_s16, %s420_s2  ;;  %p426_p4 = scmp.lt.s32.totalorder %s420_s2, %s420_s2 }
  0x2d   :  { %341 = vmatpush3.bf16.msra.mxu0 %v370_v2  ;;  %349 = vmatpush3.bf16.msra.mxu1 %v374_v5  ;;  %p427_p5 = por %p426_p4, %p425_p3 }
  0x2e   :  { %354 = vmatprep.subr.bf16.mxu0 %v452_v0 }
  0x2f   :  { %p428_p6 = pnand %p427_p5, %p421_p2 }
  0x30   :  { %343 = vmatmul.mubr.msk.bf16.vlgmr.msra.gmra.mrb[0].mxu0 %vm74_vm1, %v372_v4  ;;  %351 = vmatmul.mubr.msk.bf16.vlgmr.msra.gmra.mrb[0].mxu1 %vm74_vm1, %v372_v4 }
  0x31   :  { %355 = vmatpush3.bf16.msra.mxu0 %v373_v6  ;;  %358 = vmatprep.mubr.msk.bf16.mxu0 %vm453_vm0, %v452_v0 }
  0x32   :  { %356 = vmatprep.subr.bf16.mxu0 %v452_v0 }
  0x35   :  { %357 = vmatpush3.bf16.msra.mxu0 %v375_v7 }
  0x38   :  { %359 = vmatmul.mubr.msk.bf16.vlgmr.msra.gmra.mrb[4].mxu0 %vm74_vm1, %v372_v4 }
 0x103   :  { %v112_v9 = vpop.f32.mrb[0].mxu0  ;;  %v189_v14 = vpop.f32.mrb[0].mxu1 }
 0x104   :  { %v113_v11 = vadd.f32 %v302_v8, %v112_v9  ;;  %v344_v12 = vpop.f32.mrb[1].mxu0  ;;  %v190_v18 = vadd.f32 %v310_v10, %v189_v14  ;;  %v352_v19 = vpop.f32.mrb[1].mxu1 }
 0x105   :  { %v115_v13 = vpop.f32.mrb[2].mxu0  ;;  %v192_v20 = vpop.f32.mrb[2].mxu1 }
 0x106   :  { %v323_v15 = vpack.c.bf16 %v113_v11, %v113_v11  ;;  %v116_v16 = vadd.f32 %v302_v8, %v115_v13  ;;  %v345_v17 = vpop.f32.mrb[3].mxu0  ;;  %v325_v22 = vpack.c.bf16 %v190_v18, %v190_v18  ;;  %v193_v23 = vadd.f32 %v310_v10, %v192_v20  ;;  %v353_v24 = vpop.f32.mrb[3].mxu1 }
 0x108   :  { %128 = vst.msk [vmem:[#allocation7] sm:$0xf] %vm127_vm2, %v323_v15  ;;  %v324_v21 = vpack.c.bf16 %v116_v16, %v116_v16  ;;  %205 = vst.msk [vmem:[#allocation7 + $0x8] sm:$0xf] %vm127_vm2, %v325_v22  ;;  %v326_v26 = vpack.c.bf16 %v193_v23, %v193_v23 }
 0x10a   :  { %129 = vst.msk [vmem:[#allocation7 + $0x4] sm:$0xf] %vm127_vm2, %v324_v21  ;;  %206 = vst.msk [vmem:[#allocation7 + $0xc] sm:$0xf] %vm127_vm2, %v326_v26 }
 0x10b   :  { %v266_v27 = vpop.f32.mrb[4].mxu0 }
 0x10c   :  { %v267_v28 = vadd.f32 %v317_v25, %v266_v27  ;;  %v360_v29 = vpop.f32.mrb[5].mxu0 }
 0x10d   :  { %v269_v30 = vpop.f32.mrb[6].mxu0 }
 0x10e   :  { %v327_v31 = vpack.c.bf16 %v267_v28, %v267_v28  ;;  %v270_v32 = vadd.f32 %v317_v25, %v269_v30  ;;  %v361_v33 = vpop.f32.mrb[7].mxu0 }
 0x110   :  { %282 = vst.msk [vmem:[#allocation7 + $0x10] sm:$0xf] %vm127_vm2, %v327_v31  ;;  %v328_v34 = vpack.c.bf16 %v270_v32, %v270_v32 }
 0x112   :  { %283 = vst.msk [vmem:[#allocation7 + $0x14] sm:$0xf] %vm127_vm2, %v328_v34 }
 0x113   :  { %431 = shalt.err (!%p428_p6)
}
 0x114   :  { %s432_s19 = scalar_lea.hbm %s541_s3, 384 }
 0x115   :  { %p433_p7 = scmp.ne.s32.totalorder %s541_s3, %s432_s19  ;;  %p436_p8 = scmp.lt.u32.totalorder %s432_s19, %s541_s3 }
 0x117   :  { %p438_p9 = pnand %p436_p8, %p433_p7 }
 0x119   :  { %441 = shalt.err (!%p438_p9)
}
 0x11a   :  { %295 = dma.vmem_to_hbm [thread:$0]  %s290_s16, 384, %s541_s3, [#allocation4], %s449_s22, %s449_s22, %s450_s23  }
 0x11b   :  { %446 = dma.done.wait [#allocation4], 384  }
 0x11c   :  { %447 = vsyncadd [#allocation4], 4294966912 }
 0x11d   :  { %299 = vsyncpa [#allocation3], 1 }
 0x11e   :  { %300 = vsyncpa [#allocation6], 1 }
 0x11f   :  { %301 = vsyncpa [#allocation4], 1 }

</bundles_post_ra>
